<compile_context>
chip_gen: v5e
topology: v5e:2x2
jax: 0.10.0
libtpu: 0.0.40
codegen_flags: <defaults>
</compile_context>

<pallas_src>
import functools

import jax
import jax.numpy as jnp
import numpy as np
from jax.experimental import pallas as pl
from jax.experimental.pallas import tpu as pltpu

_ONE_F32_BITS = 0x3F800000  # int32 bit pattern of float32 1.0
_INT32_MIN = -(2 ** 31)


def _greedy_match_kernel(ps_ref, pe_ref, ts_ref, te_ref, idx_ref, mask_ref,
                         *, num_queries):
    """One block of BLOCK_B batch rows per grid step.

    ps_ref / pe_ref : VMEM [BLOCK_B, Q_pad] f32  prediction starts / ends (zero pad).
    ts_ref / te_ref : VMEM [BLOCK_B, T]     f32  target starts / ends, sorted by
                                                 descending length per row.
    idx_ref         : VMEM [BLOCK_B, T]     i32  matched prediction per target.
    mask_ref        : VMEM [BLOCK_B, Q_pad] i32  final taken mask (is_matched).
    """
    block_b, q_pad = ps_ref.shape
    T = idx_ref.shape[1]
    eps = jnp.float32(1e-8)
    two = jnp.float32(2.0)

    ps = ps_ref[...]                    # [BLOCK_B, Q_pad]
    pe = pe_ref[...]
    plen = pe - ps
    tstart = ts_ref[...]                # [BLOCK_B, T]
    tend = te_ref[...]

    lane = jax.lax.broadcasted_iota(jnp.int32, (block_b, q_pad), 1)
    col = jax.lax.broadcasted_iota(jnp.int32, (block_b, T), 1)
    # Padded lanes (>= num_queries) start out "taken" so they can never win.
    taken0 = lane >= num_queries

    # Low bits of the packed argmax key hold the inverted lane index so that,
    # for equal scores, the LOWER lane produces the LARGER key (stable tie-break).
    shift = pl.next_power_of_2(num_queries)       # static python int, <= 128
    log2_shift = shift.bit_length() - 1
    inv_lane = (shift - 1) - lane
    one_bits = jnp.int32(_ONE_F32_BITS)
    neg_key = jnp.int32(_INT32_MIN)
    lane_mask = jnp.int32(shift - 1)

    acc0 = jnp.zeros((block_b, T), jnp.int32)     # packed best key per target

    def body(ti, carry):
        taken, acc = carry
        sel = col == ti                                   # one-hot column select
        ts = jnp.sum(jnp.where(sel, tstart, 0.0), axis=-1, keepdims=True)  # [B,1]
        te = jnp.sum(jnp.where(sel, tend, 0.0), axis=-1, keepdims=True)    # [B,1]

        # Generalized 1-D IoU of target ti vs. all predictions (pure VPU ops).
        inter = jnp.maximum(jnp.minimum(te, pe) - jnp.maximum(ts, ps), 0.0)
        union = (te - ts) + plen - inter
        enclose = jnp.maximum(te, pe) - jnp.minimum(ts, ps)
        iou = inter / (union + eps)
        giou = iou - (enclose - union) / (enclose + eps)  # in (-1, 1]

        # Fused argmax + tie-break in a single per-row XLU max reduce:
        # giou + 2 lies in (1, 3], so its positive float32 bit pattern is
        # order-preserving; subtracting bits(1.0) keeps it below 2**24, which
        # still fits in int32 after the static left shift for the lane bits.
        # (Ties within ~1 ulp of giou collapse to the lower lane.)
        bits = pltpu.bitcast(giou + two, jnp.int32)
        packed = ((bits - one_bits) << log2_shift) + inv_lane
        key = jnp.where(taken, neg_key, packed)

        best = jnp.max(key, axis=-1, keepdims=True)       # [BLOCK_B, 1], vector
        taken_new = jnp.logical_or(taken, key == best)    # vector-only carry
        acc_new = jnp.where(sel, best, acc)               # store packed winner
        return taken_new, acc_new

    taken_f, acc_f = jax.lax.fori_loop(
        0, T, body, (taken0, acc0), unroll=(True if T <= 16 else 4))

    # Decode the winner lane index once, after the serial loop.
    idx_ref[...] = jnp.int32(shift - 1) - (acc_f & lane_mask)
    mask_ref[...] = taken_f.astype(jnp.int32)


@jax.jit
def greedy_matcher(pred_segments, tgt_segments, prediction_duration):
    """Returns a [B, 2, Q] int32 tensor.

    Row 0: matched prediction per (length-sorted) target, then the unmatched
    predictions in ascending order.  Row 1: 0..T-1 then -1 (like the reference).
    """
    B, Q, _ = pred_segments.shape
    T = tgt_segments.shape[1]
    assert T <= Q, "GreedyMatcher assumes at most as many targets as queries"
    # TODO(synk): the packed argmax key leaves log2(next_pow2(Q)) low bits for
    # the lane index; Q > 128 would overflow int32 and needs a wider key.
    assert Q <= 128
    q_pad = 128 * pl.cdiv(Q, 128)                 # = 128
    block_b = min(64, 8 * pl.cdiv(B, 8))          # sublane-batched rows per step
    b_pad = block_b * pl.cdiv(B, block_b)

    # Scale both preds and targets by the per-batch duration (exactly like the
    # reference); this is one fused elementwise multiply in the wrapper.
    scale = prediction_duration.astype(jnp.float32)[:, None, None]
    preds = pred_segments.astype(jnp.float32) * scale         # [B,Q,2]
    tgts = tgt_segments.astype(jnp.float32) * scale           # [B,T,2]

    # Sort targets by descending length (jnp.argsort is stable, matching the
    # reference's torch.sort(..., descending=True, stable)).
    lengths = tgts[:, :, 1] - tgts[:, :, 0]
    order = jnp.argsort(-lengths, axis=1)
    tgts_sorted = jnp.take_along_axis(tgts, order[:, :, None], axis=1)  # [B,T,2]

    # Lane-dense prediction tiles and small target tiles, batch padded to b_pad.
    ps = jnp.zeros((b_pad, q_pad), jnp.float32).at[:B, :Q].set(preds[:, :, 0])
    pe = jnp.zeros((b_pad, q_pad), jnp.float32).at[:B, :Q].set(preds[:, :, 1])
    ts = jnp.zeros((b_pad, T), jnp.float32).at[:B, :].set(tgts_sorted[:, :, 0])
    te = jnp.zeros((b_pad, T), jnp.float32).at[:B, :].set(tgts_sorted[:, :, 1])

    matched_pad, taken_pad = pl.pallas_call(
        functools.partial(_greedy_match_kernel, num_queries=Q),
        grid=(b_pad // block_b,),
        in_specs=[
            pl.BlockSpec((block_b, q_pad), lambda b: (b, 0)),
            pl.BlockSpec((block_b, q_pad), lambda b: (b, 0)),
            pl.BlockSpec((block_b, T), lambda b: (b, 0)),
            pl.BlockSpec((block_b, T), lambda b: (b, 0)),
        ],
        out_specs=[
            pl.BlockSpec((block_b, T), lambda b: (b, 0)),
            pl.BlockSpec((block_b, q_pad), lambda b: (b, 0)),
        ],
        out_shape=[
            jax.ShapeDtypeStruct((b_pad, T), jnp.int32),
            jax.ShapeDtypeStruct((b_pad, q_pad), jnp.int32),
        ],
        # TODO(synk): on v7x, consider pltpu.CORE_PARALLEL / core_map over the
        # batch axis to guarantee 2-TC sharding; "parallel" is the portable choice.
        compiler_params=pltpu.CompilerParams(dimension_semantics=("parallel",)),
    )(ps, pe, ts, te)

    matched = matched_pad[:B]                         # [B, T]
    is_matched = taken_pad[:B, :Q] > 0                # [B, Q] (taken mask reuse)

    # Glue (jitted together with the kernel): assemble the [B, 2, Q] index
    # tensor exactly like the reference (unmatched predictions appended in
    # ascending order, target index -1 for them).
    qid = jnp.arange(Q, dtype=jnp.int32)
    sort_key = jnp.where(is_matched, Q + qid[None, :], qid[None, :])
    unmatched = jnp.argsort(sort_key, axis=1)[:, : Q - T].astype(jnp.int32)
    row0 = jnp.concatenate([matched, unmatched], axis=1)
    row1 = jnp.concatenate(
        [jnp.broadcast_to(jnp.arange(T, dtype=jnp.int32), (B, T)),
         jnp.full((B, Q - T), -1, jnp.int32)], axis=1)
    return jnp.stack([row0, row1], axis=1)            # [B, 2, Q] int32


if __name__ == "__main__":
    B, Q, T = 2, 8, 4
    key = jax.random.PRNGKey(0)
    k1, k2, k3, k4 = jax.random.split(key, 4)

    p_start = jax.random.uniform(k1, (B, Q, 1), minval=0.0, maxval=0.5)
    p_len = jax.random.uniform(k2, (B, Q, 1), minval=0.05, maxval=0.5)
    pred_segments = jnp.concatenate([p_start, p_start + p_len], axis=-1)   # [B,Q,2]

    t_start = jax.random.uniform(k3, (B, T, 1), minval=0.0, maxval=0.5)
    t_len = jax.random.uniform(k4, (B, T, 1), minval=0.05, maxval=0.5)
    tgt_segments = jnp.concatenate([t_start, t_start + t_len], axis=-1)    # [B,T,2]

    prediction_duration = jnp.array([30.0, 45.0], dtype=jnp.float32)       # [B]

    # NOTE: the reference also softmaxes outputs['pred_logits'], but that value
    # is dead code w.r.t. the returned indices, so it is intentionally omitted.

    out = jax.block_until_ready(
        greedy_matcher(pred_segments, tgt_segments, prediction_duration))  # [B,2,Q]

    # --- reference check: numpy float32 greedy matching with the same semantics ---
    dur = np.asarray(prediction_duration, dtype=np.float32)
    pn = np.asarray(pred_segments, dtype=np.float32) * dur[:, None, None]
    tn = np.asarray(tgt_segments, dtype=np.float32) * dur[:, None, None]
    eps = np.float32(1e-8)
    for b in range(B):
        order = np.argsort(-(tn[b, :, 1] - tn[b, :, 0]), kind="stable")
        tsrt = tn[b][order]                                   # [T, 2]
        tss, tee = tsrt[:, :1], tsrt[:, 1:2]
        pss, pee = pn[b, :, 0][None, :], pn[b, :, 1][None, :]
        inter = np.maximum(np.minimum(tee, pee) - np.maximum(tss, pss), np.float32(0))
        union = (tee - tss) + (pee - pss) - inter
        enclose = np.maximum(tee, pee) - np.minimum(tss, pss)
        giou = inter / (union + eps) - (enclose - union) / (enclose + eps)  # [T,Q]
        taken = np.zeros(Q, bool)
        expected = []
        for ti in range(T):
            row = giou[ti].copy()
            row[taken] = -np.inf
            pi = int(np.argmax(row))        # np.argmax -> lowest index on ties
            taken[pi] = True
            expected.append(pi)
        got = [int(v) for v in out[b, 0, :T]]
        assert got == expected, (b, got, expected)
        assert sorted(int(v) for v in out[b, 0]) == list(range(Q))
        assert [int(v) for v in out[b, 1]] == list(range(T)) + [-1] * (Q - T)

    print("KERNEL_OK")
</pallas_src>

<mosaic_0001>
module attributes {stable_mosaic.version = 11 : i64} {
  func.func @_greedy_match_kernel(%arg0: i32, %arg1: memref<8x128xf32, #tpu.memory_space<vmem>>, %arg2: memref<8x128xf32, #tpu.memory_space<vmem>>, %arg3: memref<8x4xf32, #tpu.memory_space<vmem>>, %arg4: memref<8x4xf32, #tpu.memory_space<vmem>>, %arg5: memref<8x4xi32, #tpu.memory_space<vmem>>, %arg6: memref<8x128xi32, #tpu.memory_space<vmem>>) attributes {dimension_semantics = [#tpu.dimension_semantics<parallel>], iteration_bounds = array<i64: 1>, scalar_prefetch = 0 : i64, scratch_operands = 0 : i64, tpu.core_type = #tpu.core_type<tc>, window_params = [{transform_indices = @transform_0, window_bounds = array<i64: 8, 128>}, {transform_indices = @transform_1, window_bounds = array<i64: 8, 128>}, {transform_indices = @transform_2, window_bounds = array<i64: 8, 4>}, {transform_indices = @transform_3, window_bounds = array<i64: 8, 4>}, {transform_indices = @transform_4, window_bounds = array<i64: 8, 4>}, {transform_indices = @transform_5, window_bounds = array<i64: 8, 128>}]} {
    %c0 = arith.constant 0 : index
    %c0_0 = arith.constant 0 : index
    %0 = vector.load %arg1[%c0, %c0_0] : memref<8x128xf32, #tpu.memory_space<vmem>>, vector<8x128xf32>
    %c0_1 = arith.constant 0 : index
    %c0_2 = arith.constant 0 : index
    %1 = vector.load %arg2[%c0_1, %c0_2] : memref<8x128xf32, #tpu.memory_space<vmem>>, vector<8x128xf32>
    %2 = arith.subf %1, %0 : vector<8x128xf32>
    %c0_3 = arith.constant 0 : index
    %c0_4 = arith.constant 0 : index
    %3 = vector.load %arg3[%c0_3, %c0_4] : memref<8x4xf32, #tpu.memory_space<vmem>>, vector<8x4xf32>
    %c0_5 = arith.constant 0 : index
    %c0_6 = arith.constant 0 : index
    %4 = vector.load %arg4[%c0_5, %c0_6] : memref<8x4xf32, #tpu.memory_space<vmem>>, vector<8x4xf32>
    %5 = tpu.iota {dimensions = array<i32: 1>} : vector<8x128xi32>
    %6 = tpu.iota {dimensions = array<i32: 1>} : vector<8x4xi32>
    %c8_i32 = arith.constant 8 : i32
    %7 = vector.broadcast %c8_i32 : i32 to vector<8x128xi32>
    %8 = arith.cmpi sge, %5, %7 : vector<8x128xi32>
    %c7_i32 = arith.constant 7 : i32
    %9 = vector.broadcast %c7_i32 : i32 to vector<8x128xi32>
    %10 = arith.subi %9, %5 : vector<8x128xi32>
    %c0_i32 = arith.constant 0 : i32
    %11 = vector.broadcast %c0_i32 : i32 to vector<8x4xi32>
    %cst = arith.constant 9.99999993E-9 : f32
    %cst_7 = arith.constant 2.000000e+00 : f32
    %c1065353216_i32 = arith.constant 1065353216 : i32
    %c-2147483648_i32 = arith.constant -2147483648 : i32
    %c0_i32_8 = arith.constant 0 : i32
    %12 = vector.broadcast %c0_i32_8 : i32 to vector<8x4xi32>
    %13 = arith.cmpi eq, %6, %12 : vector<8x4xi32>
    %cst_9 = arith.constant 0.000000e+00 : f32
    %14 = vector.broadcast %cst_9 : f32 to vector<8x4xf32>
    %15 = arith.select %13, %3, %14 : vector<8x4xi1>, vector<8x4xf32>
    %cst_10 = arith.constant dense<0.000000e+00> : vector<8xf32>
    %16 = vector.multi_reduction <add>, %15, %cst_10 [1] : vector<8x4xf32> to vector<8xf32>
    %17 = vector.shape_cast %16 : vector<8xf32> to vector<8x1xf32>
    %cst_11 = arith.constant 0.000000e+00 : f32
    %18 = vector.broadcast %cst_11 : f32 to vector<8x4xf32>
    %19 = arith.select %13, %4, %18 : vector<8x4xi1>, vector<8x4xf32>
    %cst_12 = arith.constant dense<0.000000e+00> : vector<8xf32>
    %20 = vector.multi_reduction <add>, %19, %cst_12 [1] : vector<8x4xf32> to vector<8xf32>
    %21 = vector.shape_cast %20 : vector<8xf32> to vector<8x1xf32>
    %22 = vector.broadcast %21 : vector<8x1xf32> to vector<8x128xf32>
    %23 = arith.minimumf %22, %1 : vector<8x128xf32>
    %24 = vector.broadcast %17 : vector<8x1xf32> to vector<8x128xf32>
    %25 = arith.maximumf %24, %0 : vector<8x128xf32>
    %26 = arith.subf %23, %25 : vector<8x128xf32>
    %cst_13 = arith.constant 0.000000e+00 : f32
    %27 = vector.broadcast %cst_13 : f32 to vector<8x128xf32>
    %28 = arith.maximumf %26, %27 : vector<8x128xf32>
    %29 = arith.subf %21, %17 : vector<8x1xf32>
    %30 = vector.broadcast %29 : vector<8x1xf32> to vector<8x128xf32>
    %31 = arith.addf %30, %2 : vector<8x128xf32>
    %32 = arith.subf %31, %28 : vector<8x128xf32>
    %33 = vector.broadcast %21 : vector<8x1xf32> to vector<8x128xf32>
    %34 = arith.maximumf %33, %1 : vector<8x128xf32>
    %35 = vector.broadcast %17 : vector<8x1xf32> to vector<8x128xf32>
    %36 = arith.minimumf %35, %0 : vector<8x128xf32>
    %37 = arith.subf %34, %36 : vector<8x128xf32>
    %38 = vector.broadcast %cst : f32 to vector<8x128xf32>
    %39 = arith.addf %32, %38 : vector<8x128xf32>
    %40 = arith.divf %28, %39 : vector<8x128xf32>
    %41 = arith.subf %37, %32 : vector<8x128xf32>
    %42 = vector.broadcast %cst : f32 to vector<8x128xf32>
    %43 = arith.addf %37, %42 : vector<8x128xf32>
    %44 = arith.divf %41, %43 : vector<8x128xf32>
    %45 = arith.subf %40, %44 : vector<8x128xf32>
    %46 = vector.broadcast %cst_7 : f32 to vector<8x128xf32>
    %47 = arith.addf %45, %46 : vector<8x128xf32>
    %48 = tpu.bitcast %47 : vector<8x128xf32> -> vector<8x128xi32>
    %49 = vector.broadcast %c1065353216_i32 : i32 to vector<8x128xi32>
    %50 = arith.subi %48, %49 : vector<8x128xi32>
    %c3_i32 = arith.constant 3 : i32
    %51 = vector.broadcast %c3_i32 : i32 to vector<8x128xi32>
    %52 = arith.shli %50, %51 : vector<8x128xi32>
    %53 = arith.addi %52, %10 : vector<8x128xi32>
    %54 = vector.broadcast %c-2147483648_i32 : i32 to vector<8x128xi32>
    %55 = arith.select %8, %54, %53 : vector<8x128xi1>, vector<8x128xi32>
    %cst_14 = arith.constant dense<-2147483648> : vector<8xi32>
    %56 = vector.multi_reduction <maxsi>, %55, %cst_14 [1] : vector<8x128xi32> to vector<8xi32>
    %57 = vector.shape_cast %56 : vector<8xi32> to vector<8x1xi32>
    %58 = vector.broadcast %57 : vector<8x1xi32> to vector<8x128xi32>
    %59 = arith.cmpi eq, %55, %58 : vector<8x128xi32>
    %60 = arith.ori %8, %59 : vector<8x128xi1>
    %61 = vector.shape_cast %57 : vector<8x1xi32> to vector<8x1xi32>
    %62 = vector.broadcast %61 : vector<8x1xi32> to vector<8x4xi32>
    %63 = arith.select %13, %62, %11 : vector<8x4xi1>, vector<8x4xi32>
    %c1_i32 = arith.constant 1 : i32
    %64 = vector.broadcast %c1_i32 : i32 to vector<8x4xi32>
    %65 = arith.cmpi eq, %6, %64 : vector<8x4xi32>
    %cst_15 = arith.constant 0.000000e+00 : f32
    %66 = vector.broadcast %cst_15 : f32 to vector<8x4xf32>
    %67 = arith.select %65, %3, %66 : vector<8x4xi1>, vector<8x4xf32>
    %cst_16 = arith.constant dense<0.000000e+00> : vector<8xf32>
    %68 = vector.multi_reduction <add>, %67, %cst_16 [1] : vector<8x4xf32> to vector<8xf32>
    %69 = vector.shape_cast %68 : vector<8xf32> to vector<8x1xf32>
    %cst_17 = arith.constant 0.000000e+00 : f32
    %70 = vector.broadcast %cst_17 : f32 to vector<8x4xf32>
    %71 = arith.select %65, %4, %70 : vector<8x4xi1>, vector<8x4xf32>
    %cst_18 = arith.constant dense<0.000000e+00> : vector<8xf32>
    %72 = vector.multi_reduction <add>, %71, %cst_18 [1] : vector<8x4xf32> to vector<8xf32>
    %73 = vector.shape_cast %72 : vector<8xf32> to vector<8x1xf32>
    %74 = vector.broadcast %73 : vector<8x1xf32> to vector<8x128xf32>
    %75 = arith.minimumf %74, %1 : vector<8x128xf32>
    %76 = vector.broadcast %69 : vector<8x1xf32> to vector<8x128xf32>
    %77 = arith.maximumf %76, %0 : vector<8x128xf32>
    %78 = arith.subf %75, %77 : vector<8x128xf32>
    %cst_19 = arith.constant 0.000000e+00 : f32
    %79 = vector.broadcast %cst_19 : f32 to vector<8x128xf32>
    %80 = arith.maximumf %78, %79 : vector<8x128xf32>
    %81 = arith.subf %73, %69 : vector<8x1xf32>
    %82 = vector.broadcast %81 : vector<8x1xf32> to vector<8x128xf32>
    %83 = arith.addf %82, %2 : vector<8x128xf32>
    %84 = arith.subf %83, %80 : vector<8x128xf32>
    %85 = vector.broadcast %73 : vector<8x1xf32> to vector<8x128xf32>
    %86 = arith.maximumf %85, %1 : vector<8x128xf32>
    %87 = vector.broadcast %69 : vector<8x1xf32> to vector<8x128xf32>
    %88 = arith.minimumf %87, %0 : vector<8x128xf32>
    %89 = arith.subf %86, %88 : vector<8x128xf32>
    %90 = vector.broadcast %cst : f32 to vector<8x128xf32>
    %91 = arith.addf %84, %90 : vector<8x128xf32>
    %92 = arith.divf %80, %91 : vector<8x128xf32>
    %93 = arith.subf %89, %84 : vector<8x128xf32>
    %94 = vector.broadcast %cst : f32 to vector<8x128xf32>
    %95 = arith.addf %89, %94 : vector<8x128xf32>
    %96 = arith.divf %93, %95 : vector<8x128xf32>
    %97 = arith.subf %92, %96 : vector<8x128xf32>
    %98 = vector.broadcast %cst_7 : f32 to vector<8x128xf32>
    %99 = arith.addf %97, %98 : vector<8x128xf32>
    %100 = tpu.bitcast %99 : vector<8x128xf32> -> vector<8x128xi32>
    %101 = vector.broadcast %c1065353216_i32 : i32 to vector<8x128xi32>
    %102 = arith.subi %100, %101 : vector<8x128xi32>
    %c3_i32_20 = arith.constant 3 : i32
    %103 = vector.broadcast %c3_i32_20 : i32 to vector<8x128xi32>
    %104 = arith.shli %102, %103 : vector<8x128xi32>
    %105 = arith.addi %104, %10 : vector<8x128xi32>
    %106 = vector.broadcast %c-2147483648_i32 : i32 to vector<8x128xi32>
    %107 = arith.select %60, %106, %105 : vector<8x128xi1>, vector<8x128xi32>
    %cst_21 = arith.constant dense<-2147483648> : vector<8xi32>
    %108 = vector.multi_reduction <maxsi>, %107, %cst_21 [1] : vector<8x128xi32> to vector<8xi32>
    %109 = vector.shape_cast %108 : vector<8xi32> to vector<8x1xi32>
    %110 = vector.broadcast %109 : vector<8x1xi32> to vector<8x128xi32>
    %111 = arith.cmpi eq, %107, %110 : vector<8x128xi32>
    %112 = arith.ori %60, %111 : vector<8x128xi1>
    %113 = vector.shape_cast %109 : vector<8x1xi32> to vector<8x1xi32>
    %114 = vector.broadcast %113 : vector<8x1xi32> to vector<8x4xi32>
    %115 = arith.select %65, %114, %63 : vector<8x4xi1>, vector<8x4xi32>
    %c2_i32 = arith.constant 2 : i32
    %116 = vector.broadcast %c2_i32 : i32 to vector<8x4xi32>
    %117 = arith.cmpi eq, %6, %116 : vector<8x4xi32>
    %cst_22 = arith.constant 0.000000e+00 : f32
    %118 = vector.broadcast %cst_22 : f32 to vector<8x4xf32>
    %119 = arith.select %117, %3, %118 : vector<8x4xi1>, vector<8x4xf32>
    %cst_23 = arith.constant dense<0.000000e+00> : vector<8xf32>
    %120 = vector.multi_reduction <add>, %119, %cst_23 [1] : vector<8x4xf32> to vector<8xf32>
    %121 = vector.shape_cast %120 : vector<8xf32> to vector<8x1xf32>
    %cst_24 = arith.constant 0.000000e+00 : f32
    %122 = vector.broadcast %cst_24 : f32 to vector<8x4xf32>
    %123 = arith.select %117, %4, %122 : vector<8x4xi1>, vector<8x4xf32>
    %cst_25 = arith.constant dense<0.000000e+00> : vector<8xf32>
    %124 = vector.multi_reduction <add>, %123, %cst_25 [1] : vector<8x4xf32> to vector<8xf32>
    %125 = vector.shape_cast %124 : vector<8xf32> to vector<8x1xf32>
    %126 = vector.broadcast %125 : vector<8x1xf32> to vector<8x128xf32>
    %127 = arith.minimumf %126, %1 : vector<8x128xf32>
    %128 = vector.broadcast %121 : vector<8x1xf32> to vector<8x128xf32>
    %129 = arith.maximumf %128, %0 : vector<8x128xf32>
    %130 = arith.subf %127, %129 : vector<8x128xf32>
    %cst_26 = arith.constant 0.000000e+00 : f32
    %131 = vector.broadcast %cst_26 : f32 to vector<8x128xf32>
    %132 = arith.maximumf %130, %131 : vector<8x128xf32>
    %133 = arith.subf %125, %121 : vector<8x1xf32>
    %134 = vector.broadcast %133 : vector<8x1xf32> to vector<8x128xf32>
    %135 = arith.addf %134, %2 : vector<8x128xf32>
    %136 = arith.subf %135, %132 : vector<8x128xf32>
    %137 = vector.broadcast %125 : vector<8x1xf32> to vector<8x128xf32>
    %138 = arith.maximumf %137, %1 : vector<8x128xf32>
    %139 = vector.broadcast %121 : vector<8x1xf32> to vector<8x128xf32>
    %140 = arith.minimumf %139, %0 : vector<8x128xf32>
    %141 = arith.subf %138, %140 : vector<8x128xf32>
    %142 = vector.broadcast %cst : f32 to vector<8x128xf32>
    %143 = arith.addf %136, %142 : vector<8x128xf32>
    %144 = arith.divf %132, %143 : vector<8x128xf32>
    %145 = arith.subf %141, %136 : vector<8x128xf32>
    %146 = vector.broadcast %cst : f32 to vector<8x128xf32>
    %147 = arith.addf %141, %146 : vector<8x128xf32>
    %148 = arith.divf %145, %147 : vector<8x128xf32>
    %149 = arith.subf %144, %148 : vector<8x128xf32>
    %150 = vector.broadcast %cst_7 : f32 to vector<8x128xf32>
    %151 = arith.addf %149, %150 : vector<8x128xf32>
    %152 = tpu.bitcast %151 : vector<8x128xf32> -> vector<8x128xi32>
    %153 = vector.broadcast %c1065353216_i32 : i32 to vector<8x128xi32>
    %154 = arith.subi %152, %153 : vector<8x128xi32>
    %c3_i32_27 = arith.constant 3 : i32
    %155 = vector.broadcast %c3_i32_27 : i32 to vector<8x128xi32>
    %156 = arith.shli %154, %155 : vector<8x128xi32>
    %157 = arith.addi %156, %10 : vector<8x128xi32>
    %158 = vector.broadcast %c-2147483648_i32 : i32 to vector<8x128xi32>
    %159 = arith.select %112, %158, %157 : vector<8x128xi1>, vector<8x128xi32>
    %cst_28 = arith.constant dense<-2147483648> : vector<8xi32>
    %160 = vector.multi_reduction <maxsi>, %159, %cst_28 [1] : vector<8x128xi32> to vector<8xi32>
    %161 = vector.shape_cast %160 : vector<8xi32> to vector<8x1xi32>
    %162 = vector.broadcast %161 : vector<8x1xi32> to vector<8x128xi32>
    %163 = arith.cmpi eq, %159, %162 : vector<8x128xi32>
    %164 = arith.ori %112, %163 : vector<8x128xi1>
    %165 = vector.shape_cast %161 : vector<8x1xi32> to vector<8x1xi32>
    %166 = vector.broadcast %165 : vector<8x1xi32> to vector<8x4xi32>
    %167 = arith.select %117, %166, %115 : vector<8x4xi1>, vector<8x4xi32>
    %c3_i32_29 = arith.constant 3 : i32
    %168 = vector.broadcast %c3_i32_29 : i32 to vector<8x4xi32>
    %169 = arith.cmpi eq, %6, %168 : vector<8x4xi32>
    %cst_30 = arith.constant 0.000000e+00 : f32
    %170 = vector.broadcast %cst_30 : f32 to vector<8x4xf32>
    %171 = arith.select %169, %3, %170 : vector<8x4xi1>, vector<8x4xf32>
    %cst_31 = arith.constant dense<0.000000e+00> : vector<8xf32>
    %172 = vector.multi_reduction <add>, %171, %cst_31 [1] : vector<8x4xf32> to vector<8xf32>
    %173 = vector.shape_cast %172 : vector<8xf32> to vector<8x1xf32>
    %cst_32 = arith.constant 0.000000e+00 : f32
    %174 = vector.broadcast %cst_32 : f32 to vector<8x4xf32>
    %175 = arith.select %169, %4, %174 : vector<8x4xi1>, vector<8x4xf32>
    %cst_33 = arith.constant dense<0.000000e+00> : vector<8xf32>
    %176 = vector.multi_reduction <add>, %175, %cst_33 [1] : vector<8x4xf32> to vector<8xf32>
    %177 = vector.shape_cast %176 : vector<8xf32> to vector<8x1xf32>
    %178 = vector.broadcast %177 : vector<8x1xf32> to vector<8x128xf32>
    %179 = arith.minimumf %178, %1 : vector<8x128xf32>
    %180 = vector.broadcast %173 : vector<8x1xf32> to vector<8x128xf32>
    %181 = arith.maximumf %180, %0 : vector<8x128xf32>
    %182 = arith.subf %179, %181 : vector<8x128xf32>
    %cst_34 = arith.constant 0.000000e+00 : f32
    %183 = vector.broadcast %cst_34 : f32 to vector<8x128xf32>
    %184 = arith.maximumf %182, %183 : vector<8x128xf32>
    %185 = arith.subf %177, %173 : vector<8x1xf32>
    %186 = vector.broadcast %185 : vector<8x1xf32> to vector<8x128xf32>
    %187 = arith.addf %186, %2 : vector<8x128xf32>
    %188 = arith.subf %187, %184 : vector<8x128xf32>
    %189 = vector.broadcast %177 : vector<8x1xf32> to vector<8x128xf32>
    %190 = arith.maximumf %189, %1 : vector<8x128xf32>
    %191 = vector.broadcast %173 : vector<8x1xf32> to vector<8x128xf32>
    %192 = arith.minimumf %191, %0 : vector<8x128xf32>
    %193 = arith.subf %190, %192 : vector<8x128xf32>
    %194 = vector.broadcast %cst : f32 to vector<8x128xf32>
    %195 = arith.addf %188, %194 : vector<8x128xf32>
    %196 = arith.divf %184, %195 : vector<8x128xf32>
    %197 = arith.subf %193, %188 : vector<8x128xf32>
    %198 = vector.broadcast %cst : f32 to vector<8x128xf32>
    %199 = arith.addf %193, %198 : vector<8x128xf32>
    %200 = arith.divf %197, %199 : vector<8x128xf32>
    %201 = arith.subf %196, %200 : vector<8x128xf32>
    %202 = vector.broadcast %cst_7 : f32 to vector<8x128xf32>
    %203 = arith.addf %201, %202 : vector<8x128xf32>
    %204 = tpu.bitcast %203 : vector<8x128xf32> -> vector<8x128xi32>
    %205 = vector.broadcast %c1065353216_i32 : i32 to vector<8x128xi32>
    %206 = arith.subi %204, %205 : vector<8x128xi32>
    %c3_i32_35 = arith.constant 3 : i32
    %207 = vector.broadcast %c3_i32_35 : i32 to vector<8x128xi32>
    %208 = arith.shli %206, %207 : vector<8x128xi32>
    %209 = arith.addi %208, %10 : vector<8x128xi32>
    %210 = vector.broadcast %c-2147483648_i32 : i32 to vector<8x128xi32>
    %211 = arith.select %164, %210, %209 : vector<8x128xi1>, vector<8x128xi32>
    %cst_36 = arith.constant dense<-2147483648> : vector<8xi32>
    %212 = vector.multi_reduction <maxsi>, %211, %cst_36 [1] : vector<8x128xi32> to vector<8xi32>
    %213 = vector.shape_cast %212 : vector<8xi32> to vector<8x1xi32>
    %214 = vector.broadcast %213 : vector<8x1xi32> to vector<8x128xi32>
    %215 = arith.cmpi eq, %211, %214 : vector<8x128xi32>
    %216 = arith.ori %164, %215 : vector<8x128xi1>
    %217 = vector.shape_cast %213 : vector<8x1xi32> to vector<8x1xi32>
    %218 = vector.broadcast %217 : vector<8x1xi32> to vector<8x4xi32>
    %219 = arith.select %169, %218, %167 : vector<8x4xi1>, vector<8x4xi32>
    %c4_i32 = arith.constant 4 : i32
    %c7_i32_37 = arith.constant 7 : i32
    %220 = vector.broadcast %c7_i32_37 : i32 to vector<8x4xi32>
    %221 = arith.andi %219, %220 : vector<8x4xi32>
    %c7_i32_38 = arith.constant 7 : i32
    %222 = vector.broadcast %c7_i32_38 : i32 to vector<8x4xi32>
    %223 = arith.subi %222, %221 : vector<8x4xi32>
    %c0_39 = arith.constant 0 : index
    %c0_40 = arith.constant 0 : index
    %224 = vector.load %arg5[%c0_39, %c0_40] : memref<8x4xi32, #tpu.memory_space<vmem>>, vector<8x4xi32>
    tpu.vector_store %arg5[%c0_39, %c0_40], %223 {strides = array<i32>} : memref<8x4xi32, #tpu.memory_space<vmem>>, vector<8x4xi32>,
    %225 = arith.extui %216 : vector<8x128xi1> to vector<8x128xi32>
    %c0_41 = arith.constant 0 : index
    %c0_42 = arith.constant 0 : index
    %226 = vector.load %arg6[%c0_41, %c0_42] : memref<8x128xi32, #tpu.memory_space<vmem>>, vector<8x128xi32>
    tpu.vector_store %arg6[%c0_41, %c0_42], %225 {strides = array<i32>} : memref<8x128xi32, #tpu.memory_space<vmem>>, vector<8x128xi32>,
    return
  }
  func.func @transform_0(%arg0: i32) -> (i32, i32) {
    %c0_i32 = arith.constant 0 : i32
    %c0_i32_0 = arith.constant 0 : i32
    return %arg0, %c0_i32 : i32, i32
  }
  func.func @transform_1(%arg0: i32) -> (i32, i32) {
    %c0_i32 = arith.constant 0 : i32
    %c0_i32_0 = arith.constant 0 : i32
    return %arg0, %c0_i32 : i32, i32
  }
  func.func @transform_2(%arg0: i32) -> (i32, i32) {
    %c0_i32 = arith.constant 0 : i32
    %c0_i32_0 = arith.constant 0 : i32
    return %arg0, %c0_i32 : i32, i32
  }
  func.func @transform_3(%arg0: i32) -> (i32, i32) {
    %c0_i32 = arith.constant 0 : i32
    %c0_i32_0 = arith.constant 0 : i32
    return %arg0, %c0_i32 : i32, i32
  }
  func.func @transform_4(%arg0: i32) -> (i32, i32) {
    %c0_i32 = arith.constant 0 : i32
    %c0_i32_0 = arith.constant 0 : i32
    return %arg0, %c0_i32 : i32, i32
  }
  func.func @transform_5(%arg0: i32) -> (i32, i32) {
    %c0_i32 = arith.constant 0 : i32
    %c0_i32_0 = arith.constant 0 : i32
    return %arg0, %c0_i32 : i32, i32
  }
}

</mosaic_0001>

<bundles_post_ra>
// kernel: greedy_matcher.1
= control target key start
LH: loop header
LB: loop body
LE: loop exit
PB: predicated region body
PF: predicated region fallthrough
CT: control target
= control target key end

     0   :  { %v24_v0 = vlaneseq  ;;  %vm30_vm0 = vcmask 31744   ;;  %s561_s2 = inlined_call_operand.vmem [shape: f32[8,4], index: 2, kind: input, shape index: {}]   ;;  %s562_s3 = inlined_call_operand.vmem [shape: f32[8,4], index: 3, kind: input, shape index: {}]   ;;  %s563_s0 = inlined_call_operand.vmem [shape: f32[8,128], index: 0, kind: input, shape index: {}]   ;;  %s564_s1 = inlined_call_operand.vmem [shape: f32[8,128], index: 1, kind: input, shape index: {}]   ;;  %s565_s5 = inlined_call_operand.vmem [shape: s32[8,128], index: 5, kind: output, shape index: {1}]   ;;  %s566_s4 = inlined_call_operand.vmem [shape: s32[8,4], index: 4, kind: output, shape index: {0}]  }
   0x1   :  { %v401_v1 = vld [vmem:[%s561_s2] sm:$0xff] }
   0x2   :  { %v403_v2 = vand.u32 127, %v24_v0  ;;  %v413_v5 = vld [vmem:[%s562_s3] sm:$0xff] }
   0x3   :  { %v422_v9 = vld [vmem:[%s563_s0] sm:$0xff] }
   0x4   :  { %vm28_vm1 = vcmp.eq.s32.totalorder %v403_v2, 0  ;;  %v427_v10 = vld [vmem:[%s564_s1] sm:$0xff]  ;;  %vm105_vm2 = vcmp.eq.s32.totalorder %v403_v2, 1  ;;  %v444_v52 = vsub.s32 7, %v403_v2  ;;  %vm26_vm11 = vcmp.ge.s32.totalorder %v403_v2, 8 }
   0x5   :  { %v29_v3 = vsel %vm28_vm1, %v401_v1, 0.0  ;;  %v34_v6 = vsel %vm28_vm1, %v413_v5, 0.0  ;;  %v432_v13 = vsub.f32 %v427_v10, %v422_v9  ;;  %v110_v27 = vsel %vm105_vm2, %v413_v5, 0.0 }
   0x6   :  { %v31_v4 = vsel %vm30_vm0, %v29_v3, 0.0  ;;  %v35_v7 = vsel %vm30_vm0, %v34_v6, 0.0  ;;  %v111_v28 = vsel %vm30_vm0, %v110_v27, 0.0  ;;  %v106_v59 = vsel %vm105_vm2, %v401_v1, 0.0 }
   0x7   :  { %32 = vadd.xlane.f32.xlu0 %v31_v4  ;;  %112 = vadd.xlane.f32.xlu2 %v111_v28  ;;  %v107_v60 = vsel %vm30_vm0, %v106_v59, 0.0 }
   0xf   :  { %36 = vadd.xlane.f32.xlu0 %v35_v7 }
  0x7a   :  { %v33_v8 = vpop.xlane.xlu0 %32  ;;  %v113_v3 = vpop.xlane.xlu2 %112 }
  0x7b   :  { %v39_v11 = vmax.f32 %v33_v8, %v422_v9  ;;  %v46_v14 = vmin.f32 %v33_v8, %v422_v9  ;;  %v114_v6 = vmin.f32 %v113_v3, %v427_v10 }
  0x82   :  { %v37_v12 = vpop.xlane.xlu0 %36 }
  0x83   :  { %v38_v15 = vmin.f32 %v37_v12, %v427_v10  ;;  %v42_v16 = vsub.f32 %v37_v12, %v33_v8  ;;  %v45_v17 = vmax.f32 %v37_v12, %v427_v10  ;;  %v121_v12 = vmax.f32 %v113_v3, %v427_v10 }
  0x85   :  { %v40_v18 = vsub.f32 %v38_v15, %v39_v11  ;;  %v47_v19 = vsub.f32 %v45_v17, %v46_v14  ;;  %v43_v21 = vadd.f32 %v42_v16, %v432_v13 }
  0x87   :  { %v41_v20 = vmax.f32 %v40_v18, 0.0  ;;  %v65_v22 = vadd.f32 1e-08, %v47_v19 }
  0x89   :  { %v44_v23 = vsub.f32 %v43_v21, %v41_v20  ;;  %351 = vrcp.f32 %v65_v22  ;;  %v77_v33 = vand.u32 2147483648, %v65_v22  ;;  %vm71_vm4 = vweird.f32 %v65_v22 }
  0x8a   :  { %v75_v36 = vand.u32 2147483647, %v65_v22 }
  0x8b   :  { %v48_v24 = vadd.f32 1e-08, %v44_v23  ;;  %v78_v41 = vor.u32 1.1754944e-38, %v77_v33  ;;  %v64_v46 = vsub.f32 %v47_v19, %v44_v23 }
  0x8c   :  { %vm76_vm8 = vcmp.eq.f32.partialorder %v75_v36, 8.507059e+37 }
  0x8d   :  { %353 = vrcp.f32 %v48_v24  ;;  %v60_v37 = vand.u32 2147483648, %v48_v24  ;;  %v58_v39 = vand.u32 2147483647, %v48_v24  ;;  %vm54_vm7 = vweird.f32 %v48_v24 }
  0x8f   :  { %v352_v25 = vpop.eup %351  ;;  %v61_v43 = vor.u32 1.1754944e-38, %v60_v37  ;;  %vm59_vm10 = vcmp.eq.f32.partialorder %v58_v39, 8.507059e+37 }
  0x90   :  { %v67_v26 = vmul.f32 %v352_v25, %v65_v22  ;;  %vm72_vm3 = vweird.f32 %v352_v25 }
  0x91   :  { %vm73_vm5 = vmor %vm71_vm4, %vm72_vm3 }
  0x92   :  { %v68_v29 = vsub.f32 1.0, %v67_v26 }
  0x93   :  { %v354_v30 = vpop.eup %353 }
  0x94   :  { %v50_v31 = vmul.f32 %v354_v30, %v48_v24  ;;  %v69_v32 = vmul.f32 %v352_v25, %v68_v29  ;;  %vm55_vm6 = vweird.f32 %v354_v30 }
  0x95   :  { %vm56_vm9 = vmor %vm54_vm7, %vm55_vm6 }
  0x96   :  { %v51_v34 = vsub.f32 1.0, %v50_v31  ;;  %v70_v35 = vadd.f32 %v352_v25, %v69_v32 }
  0x98   :  { %v52_v38 = vmul.f32 %v354_v30, %v51_v34  ;;  %v74_v40 = vsel %vm73_vm5, %v352_v25, %v70_v35 }
  0x99   :  { %v79_v44 = vsel %vm76_vm8, %v78_v41, %v74_v40  ;;  %vm181_vm8 = vcmp.eq.s32.totalorder %v403_v2, 2 }
  0x9a   :  { %v53_v42 = vadd.f32 %v354_v30, %v52_v38  ;;  %v80_v49 = vmul.f32 %v79_v44, %v64_v46  ;;  %v182_v40 = vsel %vm181_vm8, %v401_v1, 0.0  ;;  %v186_v41 = vsel %vm181_vm8, %v413_v5, 0.0 }
  0x9b   :  { %v183_v44 = vsel %vm30_vm0, %v182_v40, 0.0 }
  0x9c   :  { %v57_v45 = vsel %vm56_vm9, %v354_v30, %v53_v42 }
  0x9d   :  { %v62_v47 = vsel %vm59_vm10, %v61_v43, %v57_v45  ;;  %v187_v45 = vsel %vm30_vm0, %v186_v41, 0.0 }
  0x9e   :  { %v63_v48 = vmul.f32 %v62_v47, %v41_v20 }
  0xa0   :  { %v81_v50 = vsub.f32 %v63_v48, %v80_v49 }
  0xa2   :  { %v82_v51 = vadd.f32 2.0, %v81_v50 }
  0xa4   :  { %v346_v53 = vadd.s32 3229614080, %v82_v51 }
  0xa6   :  { %v85_v54 = vshll.u32 %v346_v53, 3 }
  0xa8   :  { %v86_v55 = vadd.s32 %v85_v54, %v444_v52 }
  0xaa   :  { %v450_v56 = vsel %vm26_vm11, 2147483648, %v86_v55 }
  0xab   :  { %v89_v57 = vshra.s32 %v450_v56, 16  ;;  %v88_v61 = vand.u32 65535, %v450_v56 }
  0xad   :  { %v91_v58 = vcvt.s32.f32 %v89_v57  ;;  %v90_v63 = vcvt.s32.f32 %v88_v61 }
  0xaf   :  { %92 = vmax.xlane.f32.xlu1 %v91_v58 }
  0xb7   :  { %108 = vadd.xlane.f32.xlu1 %v107_v60 }
  0xbf   :  { %184 = vadd.xlane.f32.xlu1 %v183_v44 }
 0x122   :  { %v458_v62 = vpop.xlane.xlu1 %92 }
 0x123   :  { %vm94_vm12 = vcmp.eq.f32.partialorder %v91_v58, %v458_v62  ;;  %v99_v50 = vcvt.f32.s32 %v458_v62 }
 0x124   :  { %v95_v0 = vsel %vm94_vm12, %v90_v63, -inf }
 0x125   :  { %96 = vmax.xlane.f32.xlu2 %v95_v0  ;;  %v100_v54 = vshll.u32 %v99_v50, 16 }
 0x12a   :  { %v109_v4 = vpop.xlane.xlu1 %108 }
 0x12b   :  { %v115_v7 = vmax.f32 %v109_v4, %v422_v9  ;;  %v118_v11 = vsub.f32 %v113_v3, %v109_v4  ;;  %v122_v14 = vmin.f32 %v109_v4, %v422_v9 }
 0x12d   :  { %v116_v8 = vsub.f32 %v114_v6, %v115_v7  ;;  %v119_v16 = vadd.f32 %v118_v11, %v432_v13  ;;  %v123_v17 = vsub.f32 %v121_v12, %v122_v14  ;;  %188 = vadd.xlane.f32.xlu2 %v187_v45 }
 0x12f   :  { %v117_v15 = vmax.f32 %v116_v8, 0.0  ;;  %v141_v19 = vadd.f32 1e-08, %v123_v17 }
 0x131   :  { %v120_v18 = vsub.f32 %v119_v16, %v117_v15  ;;  %355 = vrcp.f32 %v141_v19  ;;  %vm147_vm13 = vweird.f32 %v141_v19  ;;  %v153_v30 = vand.u32 2147483648, %v141_v19 }
 0x132   :  { %v151_v34 = vand.u32 2147483647, %v141_v19  ;;  %v185_v6 = vpop.xlane.xlu1 %184 }
 0x133   :  { %v124_v20 = vadd.f32 1e-08, %v120_v18  ;;  %v154_v36 = vor.u32 1.1754944e-38, %v153_v30  ;;  %v140_v39 = vsub.f32 %v123_v17, %v120_v18  ;;  %v191_v8 = vmax.f32 %v185_v6, %v422_v9 }
 0x134   :  { %vm152_vm7 = vcmp.eq.f32.partialorder %v151_v34, 8.507059e+37 }
 0x135   :  { %357 = vrcp.f32 %v124_v20  ;;  %vm130_vm15 = vweird.f32 %v124_v20  ;;  %v136_v29 = vand.u32 2147483648, %v124_v20  ;;  %v134_v32 = vand.u32 2147483647, %v124_v20 }
 0x137   :  { %v356_v21 = vpop.eup %355  ;;  %v137_v35 = vor.u32 1.1754944e-38, %v136_v29  ;;  %vm135_vm6 = vcmp.eq.f32.partialorder %v134_v32, 8.507059e+37 }
 0x138   :  { %v143_v24 = vmul.f32 %v356_v21, %v141_v19  ;;  %vm148_vm14 = vweird.f32 %v356_v21 }
 0x139   :  { %vm149_vm4 = vmor %vm147_vm13, %vm148_vm14 }
 0x13a   :  { %v144_v26 = vsub.f32 1.0, %v143_v24 }
 0x13b   :  { %v358_v22 = vpop.eup %357 }
 0x13c   :  { %v126_v23 = vmul.f32 %v358_v22, %v124_v20  ;;  %v145_v28 = vmul.f32 %v356_v21, %v144_v26  ;;  %vm131_vm3 = vweird.f32 %v358_v22 }
 0x13d   :  { %vm132_vm5 = vmor %vm130_vm15, %vm131_vm3 }
 0x13e   :  { %v127_v25 = vsub.f32 1.0, %v126_v23  ;;  %v146_v33 = vadd.f32 %v356_v21, %v145_v28 }
 0x140   :  { %v128_v27 = vmul.f32 %v358_v22, %v127_v25  ;;  %v150_v38 = vsel %vm149_vm4, %v356_v21, %v146_v33 }
 0x141   :  { %v155_v43 = vsel %vm152_vm7, %v154_v36, %v150_v38  ;;  %vm257_vm7 = vcmp.eq.s32.totalorder %v403_v2, 3 }
 0x142   :  { %v129_v31 = vadd.f32 %v358_v22, %v128_v27  ;;  %v156_v47 = vmul.f32 %v155_v43, %v140_v39  ;;  %v262_v43 = vsel %vm257_vm7, %v413_v5, 0.0 }
 0x144   :  { %v133_v37 = vsel %vm132_vm5, %v358_v22, %v129_v31 }
 0x145   :  { %v138_v42 = vsel %vm135_vm6, %v137_v35, %v133_v37 }
 0x146   :  { %v139_v46 = vmul.f32 %v138_v42, %v117_v15  ;;  %v198_v15 = vmin.f32 %v185_v6, %v422_v9  ;;  %v258_v42 = vsel %vm257_vm7, %v401_v1, 0.0 }
 0x148   :  { %v157_v48 = vsub.f32 %v139_v46, %v156_v47  ;;  %v259_v46 = vsel %vm30_vm0, %v258_v42, 0.0  ;;  %v263_v47 = vsel %vm30_vm0, %v262_v43, 0.0 }
 0x149   :  { %260 = vadd.xlane.f32.xlu2 %v259_v46 }
 0x14a   :  { %v158_v49 = vadd.f32 2.0, %v157_v48 }
 0x14c   :  { %v347_v51 = vadd.s32 3229614080, %v158_v49 }
 0x14e   :  { %v161_v57 = vshll.u32 %v347_v51, 3 }
 0x150   :  { %v162_v59 = vadd.s32 %v161_v57, %v444_v52 }
 0x198   :  { %v97_v53 = vpop.xlane.xlu2 %96 }
 0x199   :  { %v98_v55 = vcvt.f32.s32 %v97_v53 }
 0x19b   :  { %v476_v58 = vadd.s32 %v100_v54, %v98_v55 }
 0x19d   :  { %vm102_vm9 = vcmp.eq.s32.totalorder %v450_v56, %v476_v58 }
 0x19e   :  { %vm483_vm10 = vmor %vm26_vm11, %vm102_vm9 }
 0x19f   :  { %v489_v61 = vsel %vm483_vm10, 2147483648, %v162_v59 }
 0x1a0   :  { %v165_v62 = vshra.s32 %v489_v61, 16  ;;  %v164_v0 = vand.u32 65535, %v489_v61  ;;  %v189_v7 = vpop.xlane.xlu2 %188 }
 0x1a1   :  { %v190_v11 = vmin.f32 %v189_v7, %v427_v10  ;;  %v194_v14 = vsub.f32 %v189_v7, %v185_v6  ;;  %v197_v16 = vmax.f32 %v189_v7, %v427_v10 }
 0x1a2   :  { %v167_v63 = vcvt.s32.f32 %v165_v62  ;;  %v166_v56 = vcvt.s32.f32 %v164_v0  ;;  %v104_v62 = vsel %vm28_vm1, %v476_v58, 0 }
 0x1a3   :  { %v192_v12 = vsub.f32 %v190_v11, %v191_v8  ;;  %v195_v18 = vadd.f32 %v194_v14, %v432_v13  ;;  %v199_v19 = vsub.f32 %v197_v16, %v198_v15 }
 0x1a4   :  { %168 = vmax.xlane.f32.xlu0 %v167_v63 }
 0x1a5   :  { %v193_v17 = vmax.f32 %v192_v12, 0.0  ;;  %v217_v21 = vadd.f32 1e-08, %v199_v19 }
 0x1a7   :  { %v196_v20 = vsub.f32 %v195_v18, %v193_v17  ;;  %359 = vrcp.f32 %v217_v21  ;;  %vm223_vm11 = vweird.f32 %v217_v21  ;;  %v229_v32 = vand.u32 2147483648, %v217_v21 }
 0x1a8   :  { %v227_v36 = vand.u32 2147483647, %v217_v21 }
 0x1a9   :  { %v200_v22 = vadd.f32 1e-08, %v196_v20  ;;  %v230_v38 = vor.u32 1.1754944e-38, %v229_v32  ;;  %v216_v41 = vsub.f32 %v199_v19, %v196_v20 }
 0x1aa   :  { %vm228_vm6 = vcmp.eq.f32.partialorder %v227_v36, 8.507059e+37 }
 0x1ab   :  { %361 = vrcp.f32 %v200_v22  ;;  %vm206_vm14 = vweird.f32 %v200_v22  ;;  %v212_v31 = vand.u32 2147483648, %v200_v22  ;;  %v210_v34 = vand.u32 2147483647, %v200_v22 }
 0x1ad   :  { %v360_v23 = vpop.eup %359  ;;  %v213_v37 = vor.u32 1.1754944e-38, %v212_v31  ;;  %vm211_vm5 = vcmp.eq.f32.partialorder %v210_v34, 8.507059e+37 }
 0x1ae   :  { %v219_v26 = vmul.f32 %v360_v23, %v217_v21  ;;  %vm224_vm13 = vweird.f32 %v360_v23 }
 0x1af   :  { %vm225_vm3 = vmor %vm223_vm11, %vm224_vm13 }
 0x1b0   :  { %v220_v28 = vsub.f32 1.0, %v219_v26 }
 0x1b1   :  { %v362_v24 = vpop.eup %361 }
 0x1b2   :  { %v202_v25 = vmul.f32 %v362_v24, %v200_v22  ;;  %v221_v30 = vmul.f32 %v360_v23, %v220_v28  ;;  %vm207_vm15 = vweird.f32 %v362_v24 }
 0x1b3   :  { %vm208_vm4 = vmor %vm206_vm14, %vm207_vm15 }
 0x1b4   :  { %v203_v27 = vsub.f32 1.0, %v202_v25  ;;  %v222_v35 = vadd.f32 %v360_v23, %v221_v30 }
 0x1b6   :  { %v204_v29 = vmul.f32 %v362_v24, %v203_v27  ;;  %v226_v40 = vsel %vm225_vm3, %v360_v23, %v222_v35 }
 0x1b7   :  { %v231_v45 = vsel %vm228_vm6, %v230_v38, %v226_v40 }
 0x1b8   :  { %v205_v33 = vadd.f32 %v362_v24, %v204_v29  ;;  %v232_v49 = vmul.f32 %v231_v45, %v216_v41 }
 0x1ba   :  { %v209_v39 = vsel %vm208_vm4, %v362_v24, %v205_v33 }
 0x1bb   :  { %v214_v44 = vsel %vm211_vm5, %v213_v37, %v209_v39 }
 0x1bc   :  { %v215_v48 = vmul.f32 %v214_v44, %v193_v17  ;;  %v261_v11 = vpop.xlane.xlu2 %260 }
 0x1bd   :  { %v267_v14 = vmax.f32 %v261_v11, %v422_v9  ;;  %v274_v18 = vmin.f32 %v261_v11, %v422_v9 }
 0x1be   :  { %v233_v50 = vsub.f32 %v215_v48, %v232_v49 }
 0x1c0   :  { %v234_v51 = vadd.f32 2.0, %v233_v50 }
 0x1c2   :  { %v348_v54 = vadd.s32 3229614080, %v234_v51 }
 0x1c4   :  { %v237_v59 = vshll.u32 %v348_v54, 3 }
 0x1c6   :  { %v238_v0 = vadd.s32 %v237_v59, %v444_v52 }
 0x217   :  { %v493_v3 = vpop.xlane.xlu0 %168 }
 0x218   :  { %vm170_vm12 = vcmp.eq.f32.partialorder %v167_v63, %v493_v3  ;;  %v175_v53 = vcvt.f32.s32 %v493_v3 }
 0x219   :  { %v171_v4 = vsel %vm170_vm12, %v166_v56, -inf }
 0x21a   :  { %172 = vmax.xlane.f32.xlu0 %v171_v4  ;;  %v176_v55 = vshll.u32 %v175_v53, 16 }
 0x222   :  { %264 = vadd.xlane.f32.xlu0 %v263_v47 }
 0x28d   :  { %v173_v1 = vpop.xlane.xlu0 %172 }
 0x28e   :  { %v174_v57 = vcvt.f32.s32 %v173_v1 }
 0x290   :  { %v177_v5 = vadd.s32 %v176_v55, %v174_v57 }
 0x292   :  { %vm178_vm9 = vcmp.eq.s32.totalorder %v489_v61, %v177_v5  ;;  %v517_v63 = vsel %vm105_vm2, %v177_v5, %v104_v62 }
 0x293   :  { %vm522_vm12 = vmor %vm483_vm10, %vm178_vm9 }
 0x294   :  { %v528_v56 = vsel %vm522_vm12, 2147483648, %v238_v0 }
 0x295   :  { %v241_v58 = vshra.s32 %v528_v56, 16  ;;  %v240_v61 = vand.u32 65535, %v528_v56  ;;  %v265_v60 = vpop.xlane.xlu0 %264 }
 0x296   :  { %v266_v12 = vmin.f32 %v265_v60, %v427_v10  ;;  %v270_v16 = vsub.f32 %v265_v60, %v261_v11  ;;  %v273_v17 = vmax.f32 %v265_v60, %v427_v10  ;;  %v367_v60 = vmov 0  }
 0x297   :  { %v243_v4 = vcvt.s32.f32 %v241_v58  ;;  %v242_v7 = vcvt.s32.f32 %v240_v61 }
 0x298   :  { %v268_v15 = vsub.f32 %v266_v12, %v267_v14  ;;  %v271_v20 = vadd.f32 %v270_v16, %v432_v13  ;;  %v275_v21 = vsub.f32 %v273_v17, %v274_v18 }
 0x299   :  { %244 = vmax.xlane.f32.xlu1 %v243_v4 }
 0x29a   :  { %v269_v19 = vmax.f32 %v268_v15, 0.0  ;;  %v293_v23 = vadd.f32 1e-08, %v275_v21 }
 0x29c   :  { %v272_v22 = vsub.f32 %v271_v20, %v269_v19  ;;  %363 = vrcp.f32 %v293_v23  ;;  %vm299_vm2 = vweird.f32 %v293_v23  ;;  %v305_v10 = vand.u32 2147483648, %v293_v23 }
 0x29d   :  { %v303_v35 = vand.u32 2147483647, %v293_v23 }
 0x29e   :  { %v276_v24 = vadd.f32 1e-08, %v272_v22  ;;  %v306_v37 = vor.u32 1.1754944e-38, %v305_v10  ;;  %v292_v40 = vsub.f32 %v275_v21, %v272_v22 }
 0x29f   :  { %vm304_vm4 = vcmp.eq.f32.partialorder %v303_v35, 8.507059e+37 }
 0x2a0   :  { %365 = vrcp.f32 %v276_v24  ;;  %vm282_vm11 = vweird.f32 %v276_v24  ;;  %v288_v9 = vand.u32 2147483648, %v276_v24  ;;  %v286_v33 = vand.u32 2147483647, %v276_v24 }
 0x2a2   :  { %v364_v25 = vpop.eup %363  ;;  %v289_v36 = vor.u32 1.1754944e-38, %v288_v9  ;;  %vm287_vm3 = vcmp.eq.f32.partialorder %v286_v33, 8.507059e+37 }
 0x2a3   :  { %v295_v28 = vmul.f32 %v364_v25, %v293_v23  ;;  %vm300_vm10 = vweird.f32 %v364_v25 }
 0x2a4   :  { %vm301_vm14 = vmor %vm299_vm2, %vm300_vm10 }
 0x2a5   :  { %v296_v30 = vsub.f32 1.0, %v295_v28 }
 0x2a6   :  { %v366_v26 = vpop.eup %365 }
 0x2a7   :  { %v278_v27 = vmul.f32 %v366_v26, %v276_v24  ;;  %v297_v32 = vmul.f32 %v364_v25, %v296_v30  ;;  %vm283_vm13 = vweird.f32 %v366_v26 }
 0x2a8   :  { %vm284_vm15 = vmor %vm282_vm11, %vm283_vm13 }
 0x2a9   :  { %v279_v29 = vsub.f32 1.0, %v278_v27  ;;  %v298_v34 = vadd.f32 %v364_v25, %v297_v32 }
 0x2ab   :  { %v280_v31 = vmul.f32 %v366_v26, %v279_v29  ;;  %v302_v39 = vsel %vm301_vm14, %v364_v25, %v298_v34 }
 0x2ac   :  { %v307_v42 = vsel %vm304_vm4, %v306_v37, %v302_v39 }
 0x2ad   :  { %v281_v13 = vadd.f32 %v366_v26, %v280_v31  ;;  %v308_v44 = vmul.f32 %v307_v42, %v292_v40 }
 0x2af   :  { %v285_v38 = vsel %vm284_vm15, %v366_v26, %v281_v13 }
 0x2b0   :  { %v290_v41 = vsel %vm287_vm3, %v289_v36, %v285_v38 }
 0x2b1   :  { %v291_v43 = vmul.f32 %v290_v41, %v269_v19 }
 0x2b3   :  { %v309_v45 = vsub.f32 %v291_v43, %v308_v44 }
 0x2b5   :  { %v310_v46 = vadd.f32 2.0, %v309_v45 }
 0x2b7   :  { %v349_v48 = vadd.s32 3229614080, %v310_v46 }
 0x2b9   :  { %v313_v53 = vshll.u32 %v349_v48, 3 }
 0x2bb   :  { %v314_v55 = vadd.s32 %v313_v53, %v444_v52 }
 0x30c   :  { %v245_v6 = vpop.xlane.xlu1 %244 }
 0x30d   :  { %vm246_vm1 = vcmp.eq.f32.partialorder %v243_v4, %v245_v6  ;;  %v251_v47 = vcvt.f32.s32 %v245_v6 }
 0x30e   :  { %v247_v8 = vsel %vm246_vm1, %v242_v7, -inf }
 0x30f   :  { %248 = vmax.xlane.f32.xlu1 %v247_v8  ;;  %v252_v50 = vshll.u32 %v251_v47, 16 }
 0x382   :  { %v249_v49 = vpop.xlane.xlu1 %248 }
 0x383   :  { %v250_v51 = vcvt.f32.s32 %v249_v49 }
 0x385   :  { %v253_v54 = vadd.s32 %v252_v50, %v250_v51 }
 0x387   :  { %vm254_vm5 = vcmp.eq.s32.totalorder %v528_v56, %v253_v54  ;;  %v256_v1 = vsel %vm181_vm8, %v253_v54, %v517_v63 }
 0x388   :  { %vm544_vm6 = vmor %vm522_vm12, %vm254_vm5 }
 0x389   :  { %v315_v59 = vsel %vm544_vm6, 2147483648, %v314_v55 }
 0x38a   :  { %v317_v5 = vshra.s32 %v315_v59, 16  ;;  %v316_v0 = vand.u32 65535, %v315_v59 }
 0x38c   :  { %v319_v62 = vcvt.s32.f32 %v317_v5  ;;  %v318_v58 = vcvt.s32.f32 %v316_v0 }
 0x38e   :  { %320 = vmax.xlane.f32.xlu2 %v319_v62 }
 0x401   :  { %v321_v56 = vpop.xlane.xlu2 %320 }
 0x402   :  { %vm322_vm9 = vcmp.eq.f32.partialorder %v319_v62, %v321_v56  ;;  %v327_v63 = vcvt.f32.s32 %v321_v56 }
 0x403   :  { %v323_v4 = vsel %vm322_vm9, %v318_v58, -inf }
 0x404   :  { %324 = vmax.xlane.f32.xlu0 %v323_v4  ;;  %v328_v61 = vshll.u32 %v327_v63, 16 }
 0x477   :  { %v325_v52 = vpop.xlane.xlu0 %324 }
 0x478   :  { %v326_v3 = vcvt.f32.s32 %v325_v52 }
 0x47a   :  { %v329_v6 = vadd.s32 %v328_v61, %v326_v3 }
 0x47c   :  { %vm330_vm8 = vcmp.eq.s32.totalorder %v315_v59, %v329_v6  ;;  %v332_v7 = vsel %vm257_vm7, %v329_v6, %v256_v1 }
 0x47d   :  { %vm331_vm12 = vmor %vm544_vm6, %vm330_vm8  ;;  %v333_v8 = vand.u32 7, %v332_v7 }
 0x47e   :  { %v336_v11 = vsel %vm331_vm12, 1, %v367_v60 }
 0x47f   :  { %v334_v12 = vsub.s32 7, %v333_v8  ;;  %337 = vst [vmem:[%s565_s5] sm:$0xff] %v336_v11 }
 0x481   :  { %335 = vst.msk [vmem:[%s566_s4] sm:$0xff] %vm30_vm0, %v334_v12 }

</bundles_post_ra>
